<compile_context>
chip_gen: v6e
topology: v6e:2x2x1
jax: 0.10.0
libtpu: 0.0.40
codegen_flags: <defaults>
</compile_context>

<pallas_src>
import jax
import jax.numpy as jnp
from jax.experimental import pallas as pl
from jax.experimental.pallas import tpu as pltpu


# --------------------------------------------------------------------------
# Kernel 1: global min/max -> delta, 1/delta, zero_point  (one pass over x)
# --------------------------------------------------------------------------
def _make_minmax_params_kernel(n_levels):
    qmax = float(n_levels - 1)

    def kernel(x_ref, delta_ref, inv_ref, zp_ref, mn_acc, mx_acc):
        j = pl.program_id(0)

        @pl.when(j == 0)
        def _():
            mn_acc[...] = jnp.full_like(mn_acc, jnp.inf)
            mx_acc[...] = jnp.full_like(mx_acc, -jnp.inf)

        xb = x_ref[...].astype(jnp.float32)                       # (tm, C)
        # per-block work stays on the VPU: fold sublanes, keep lanes
        mn_acc[...] = jnp.minimum(mn_acc[...], jnp.min(xb, axis=0, keepdims=True))
        mx_acc[...] = jnp.maximum(mx_acc[...], jnp.max(xb, axis=0, keepdims=True))

        @pl.when(j == pl.num_programs(0) - 1)
        def _():
            # single cross-lane (XLU) reduce for the whole tensor
            mn = jnp.min(mn_acc[...], axis=1, keepdims=True)      # (1,1) raw min
            mx = jnp.max(mx_acc[...], axis=1, keepdims=True)      # (1,1) raw max
            x_min = jnp.minimum(mn, 0.0)                          # clamped min
            delta = jnp.maximum((mx - mn) / qmax, 1e-8)           # raw range / (2^b-1)
            zp = jnp.round(-x_min / delta)
            delta_ref[...] = delta
            inv_ref[...] = 1.0 / delta
            zp_ref[...] = zp

    return kernel


def _minmax_params(slab, n_levels, tm):
    R, C = slab.shape
    nb = R // tm
    out11 = jax.ShapeDtypeStruct((1, 1), jnp.float32)
    # TODO(synk): on v7x this reduction pass runs on a single TensorCore; a
    # per-core partial-min/max variant (parallel grid + tiny second reduce)
    # would recover the second core's HBM bandwidth for this pass.
    return pl.pallas_call(
        _make_minmax_params_kernel(n_levels),
        out_shape=(out11, out11, out11),
        grid_spec=pltpu.PrefetchScalarGridSpec(
            num_scalar_prefetch=0,
            grid=(nb,),
            in_specs=[pl.BlockSpec((tm, C), lambda i: (i, 0))],
            out_specs=[pl.BlockSpec((1, 1), lambda i: (0, 0)) for _ in range(3)],
            scratch_shapes=[
                pltpu.VMEM((1, C), jnp.float32),
                pltpu.VMEM((1, C), jnp.float32),
            ],
        ),
        compiler_params=pltpu.CompilerParams(
            dimension_semantics=("arbitrary",)),
    )(slab)


# --------------------------------------------------------------------------
# Kernel 2: quantize -> clamp -> dequantize  (elementwise, parallel)
# --------------------------------------------------------------------------
def _make_quant_kernel(n_levels):
    qmax = float(n_levels - 1)

    def kernel(delta_ref, inv_ref, zp_ref, x_ref, o_ref):
        delta = delta_ref[0, 0]
        inv_delta = inv_ref[0, 0]
        zp = zp_ref[0, 0]
        x = x_ref[...].astype(jnp.float32)
        x_int = jnp.round(x * inv_delta) + zp       # round_ste forward == round
        x_quant = jnp.clip(x_int, 0.0, qmax)        # asymmetric clamp [0, 2^b-1]
        o_ref[...] = ((x_quant - zp) * delta).astype(o_ref.dtype)

    return kernel


def _quant_dequant(slab, delta, inv_delta, zp, n_levels, tm):
    R, C = slab.shape
    nb = R // tm
    smem = pl.BlockSpec(memory_space=pltpu.MemorySpace.SMEM)
    # TODO(synk): input_output_aliases={3: 0} would drop one HBM allocation, but
    # the slab can alias the caller's x when no padding is needed, so it's off.
    return pl.pallas_call(
        _make_quant_kernel(n_levels),
        out_shape=jax.ShapeDtypeStruct((R, C), slab.dtype),
        grid_spec=pltpu.PrefetchScalarGridSpec(
            num_scalar_prefetch=0,
            grid=(nb,),
            in_specs=[
                smem, smem, smem,
                pl.BlockSpec((tm, C), lambda i: (i, 0)),
            ],
            out_specs=pl.BlockSpec((tm, C), lambda i: (i, 0)),
        ),
        compiler_params=pltpu.CompilerParams(
            dimension_semantics=("parallel",)),
    )(delta, inv_delta, zp, slab)


# --------------------------------------------------------------------------
# Layout: flatten to a lane-dense (R, C) slab with ~2 MiB blocks
# --------------------------------------------------------------------------
def _choose_layout(n, itemsize):
    sub = max(8, 32 // itemsize)          # sublane multiple: 8 f32, 16 bf16
    if n >= (1 << 20):
        C = 1024
    elif n >= (1 << 17):
        C = 512
    else:
        C = 128                           # still lane-dense (all 128 lanes used)
    rows = pl.cdiv(n, C)
    rows_min = pl.cdiv(rows, sub) * sub
    # ~2 MiB blocks: near HBM roofline, and (2 bufs in + 2 bufs out) stays well
    # inside even v7x's default scoped VMEM.
    tm = max(sub, min(1024, (2 * 1024 * 1024) // (C * itemsize)))
    tm = (tm // sub) * sub
    tm = min(tm, rows_min)
    nb = pl.cdiv(rows, tm)
    return C, tm, nb * tm


# --------------------------------------------------------------------------
# Wrapper: UniformAffineQuantizer.forward (default config, first call)
# --------------------------------------------------------------------------
def uniform_affine_quantizer_forward(x, n_bits=8):
    """Per-tensor asymmetric quantize-dequantize, scale_method='max'."""
    n_levels = 2 ** n_bits
    orig_shape = x.shape
    flat = x.reshape(-1)
    n = flat.shape[0]
    itemsize = jnp.dtype(x.dtype).itemsize
    C, tm, R = _choose_layout(n, itemsize)

    pad = R * C - n
    if pad:
        # pad with x[0]: neutral for min/max, discarded after the quant pass
        flat = jnp.concatenate([flat, jnp.full((pad,), flat[0], dtype=flat.dtype)])
    slab = flat.reshape(R, C)

    # pass 1: min/max + quantization params (all scalar math in-kernel)
    delta, inv_delta, zp = _minmax_params(slab, n_levels, tm)

    # pass 2: quantize / dequantize.  NOTE: uses x * (1/delta); values exactly
    # on a rounding boundary may land one level away from x / delta (1-ULP).
    out_slab = _quant_dequant(slab, delta, inv_delta, zp, n_levels, tm)

    out_flat = out_slab.reshape(-1)
    if pad:
        out_flat = out_flat[:n]
    return out_flat.reshape(orig_shape)


# TODO(synk): channel_wise / symmetric / 'mse' scale-search branches of
# init_quantization_scale are not exercised by the default module config and
# are left unimplemented.


def _reference(x, n_bits=8):
    n_levels = 2 ** n_bits
    xm, xM = jnp.min(x), jnp.max(x)
    x_min = jnp.minimum(xm, 0.0)
    delta = jnp.maximum((xM - xm) / (n_levels - 1), 1e-8)
    zp = jnp.round(-x_min / delta)
    inv = 1.0 / delta                      # same reciprocal form as the kernel
    q = jnp.clip(jnp.round(x.astype(jnp.float32) * inv) + zp, 0, n_levels - 1)
    return ((q - zp) * delta).astype(x.dtype)


if __name__ == "__main__":
    key = jax.random.PRNGKey(0)
    k1, k2, k3 = jax.random.split(key, 3)

    # primary test: small NCHW activation
    x1 = jax.random.normal(k1, (2, 4, 16, 16), dtype=jnp.float32)
    # padding path: flat size not a multiple of 128
    x2 = jax.random.normal(k2, (3, 5, 17, 19), dtype=jnp.float32) * 3.0 + 1.0
    # multi-block path: exercises the accumulator across grid steps
    x3 = jax.random.normal(k3, (8, 8, 128, 128), dtype=jnp.float32)

    ok = True
    for x in (x1, x2, x3):
        out = jax.block_until_ready(uniform_affine_quantizer_forward(x, n_bits=8))
        ref = _reference(x, n_bits=8)
        ok &= (out.shape == x.shape) and (out.dtype == x.dtype)
        ok &= bool(jnp.allclose(out, ref, atol=1e-6, rtol=1e-6))
    if not ok:
        raise SystemExit("mismatch vs reference")
    print("KERNEL_OK")
</pallas_src>

<mosaic_0001>
module attributes {stable_mosaic.version = 11 : i64} {
  func.func @kernel(%arg0: i32, %arg1: memref<16x128xf32, #tpu.memory_space<vmem>>, %arg2: memref<1x1xf32, #tpu.memory_space<vmem>>, %arg3: memref<1x1xf32, #tpu.memory_space<vmem>>, %arg4: memref<1x1xf32, #tpu.memory_space<vmem>>, %arg5: memref<1x128xf32, #tpu.memory_space<vmem>>, %arg6: memref<1x128xf32, #tpu.memory_space<vmem>>) attributes {dimension_semantics = [#tpu.dimension_semantics<arbitrary>], iteration_bounds = array<i64: 1>, scalar_prefetch = 0 : i64, scratch_operands = 2 : i64, tpu.core_type = #tpu.core_type<tc>, window_params = [{transform_indices = @transform_0, window_bounds = array<i64: 16, 128>}, {pipeline_mode = #tpu.pipeline_mode<synchronous>, transform_indices = @transform_1, window_bounds = array<i64: 1, 1>}, {pipeline_mode = #tpu.pipeline_mode<synchronous>, transform_indices = @transform_2, window_bounds = array<i64: 1, 1>}, {pipeline_mode = #tpu.pipeline_mode<synchronous>, transform_indices = @transform_3, window_bounds = array<i64: 1, 1>}]} {
    %c0_i32 = arith.constant 0 : i32
    %0 = arith.cmpi eq, %arg0, %c0_i32 : i32
    %1 = arith.extui %0 : i1 to i32
    %c0_i32_0 = arith.constant 0 : i32
    %2 = arith.cmpi ne, %1, %c0_i32_0 : i32
    scf.if %2 {
      %cst_13 = arith.constant 0x7F800000 : f32
      %17 = vector.broadcast %cst_13 : f32 to vector<1x128xf32>
      %c0_14 = arith.constant 0 : index
      %c0_15 = arith.constant 0 : index
      %18 = vector.load %arg5[%c0_14, %c0_15] : memref<1x128xf32, #tpu.memory_space<vmem>>, vector<1x128xf32>
      tpu.vector_store %arg5[%c0_14, %c0_15], %17 {strides = array<i32>} : memref<1x128xf32, #tpu.memory_space<vmem>>, vector<1x128xf32>,
      %cst_16 = arith.constant 0xFF800000 : f32
      %19 = vector.broadcast %cst_16 : f32 to vector<1x128xf32>
      %c0_17 = arith.constant 0 : index
      %c0_18 = arith.constant 0 : index
      %20 = vector.load %arg6[%c0_17, %c0_18] : memref<1x128xf32, #tpu.memory_space<vmem>>, vector<1x128xf32>
      tpu.vector_store %arg6[%c0_17, %c0_18], %19 {strides = array<i32>} : memref<1x128xf32, #tpu.memory_space<vmem>>, vector<1x128xf32>,
    } else {
    }
    %c0 = arith.constant 0 : index
    %c0_1 = arith.constant 0 : index
    %3 = vector.load %arg1[%c0, %c0_1] : memref<16x128xf32, #tpu.memory_space<vmem>>, vector<16x128xf32>
    %c0_2 = arith.constant 0 : index
    %c0_3 = arith.constant 0 : index
    %4 = vector.load %arg5[%c0_2, %c0_3] : memref<1x128xf32, #tpu.memory_space<vmem>>, vector<1x128xf32>
    %cst = arith.constant dense<0x7F800000> : vector<128xf32>
    %5 = vector.multi_reduction <minimumf>, %3, %cst [0] : vector<16x128xf32> to vector<128xf32>
    %6 = vector.shape_cast %5 : vector<128xf32> to vector<1x128xf32>
    %7 = arith.minimumf %4, %6 : vector<1x128xf32>
    %c0_4 = arith.constant 0 : index
    %c0_5 = arith.constant 0 : index
    %8 = vector.load %arg5[%c0_4, %c0_5] : memref<1x128xf32, #tpu.memory_space<vmem>>, vector<1x128xf32>
    tpu.vector_store %arg5[%c0_4, %c0_5], %7 {strides = array<i32>} : memref<1x128xf32, #tpu.memory_space<vmem>>, vector<1x128xf32>,
    %c0_6 = arith.constant 0 : index
    %c0_7 = arith.constant 0 : index
    %9 = vector.load %arg6[%c0_6, %c0_7] : memref<1x128xf32, #tpu.memory_space<vmem>>, vector<1x128xf32>
    %cst_8 = arith.constant dense<0xFF800000> : vector<128xf32>
    %10 = vector.multi_reduction <maximumf>, %3, %cst_8 [0] : vector<16x128xf32> to vector<128xf32>
    %11 = vector.shape_cast %10 : vector<128xf32> to vector<1x128xf32>
    %12 = arith.maximumf %9, %11 : vector<1x128xf32>
    %c0_9 = arith.constant 0 : index
    %c0_10 = arith.constant 0 : index
    %13 = vector.load %arg6[%c0_9, %c0_10] : memref<1x128xf32, #tpu.memory_space<vmem>>, vector<1x128xf32>
    tpu.vector_store %arg6[%c0_9, %c0_10], %12 {strides = array<i32>} : memref<1x128xf32, #tpu.memory_space<vmem>>, vector<1x128xf32>,
    %c0_i32_11 = arith.constant 0 : i32
    %14 = arith.cmpi eq, %arg0, %c0_i32_11 : i32
    %15 = arith.extui %14 : i1 to i32
    %c0_i32_12 = arith.constant 0 : i32
    %16 = arith.cmpi ne, %15, %c0_i32_12 : i32
    scf.if %16 {
      %c0_13 = arith.constant 0 : index
      %c0_14 = arith.constant 0 : index
      %17 = vector.load %arg5[%c0_13, %c0_14] : memref<1x128xf32, #tpu.memory_space<vmem>>, vector<1x128xf32>
      %cst_15 = arith.constant dense<0x7F800000> : vector<1xf32>
      %18 = vector.multi_reduction <minimumf>, %17, %cst_15 [1] : vector<1x128xf32> to vector<1xf32>
      %19 = vector.shape_cast %18 : vector<1xf32> to vector<1x1xf32>
      %c0_16 = arith.constant 0 : index
      %c0_17 = arith.constant 0 : index
      %20 = vector.load %arg6[%c0_16, %c0_17] : memref<1x128xf32, #tpu.memory_space<vmem>>, vector<1x128xf32>
      %cst_18 = arith.constant dense<0xFF800000> : vector<1xf32>
      %21 = vector.multi_reduction <maximumf>, %20, %cst_18 [1] : vector<1x128xf32> to vector<1xf32>
      %22 = vector.shape_cast %21 : vector<1xf32> to vector<1x1xf32>
      %cst_19 = arith.constant 0.000000e+00 : f32
      %23 = vector.broadcast %cst_19 : f32 to vector<1x1xf32>
      %24 = arith.minimumf %19, %23 : vector<1x1xf32>
      %25 = arith.subf %22, %19 : vector<1x1xf32>
      %cst_20 = arith.constant 2.550000e+02 : f32
      %26 = vector.broadcast %cst_20 : f32 to vector<1x1xf32>
      %27 = arith.divf %25, %26 : vector<1x1xf32>
      %cst_21 = arith.constant 9.99999993E-9 : f32
      %28 = vector.broadcast %cst_21 : f32 to vector<1x1xf32>
      %29 = arith.maximumf %27, %28 : vector<1x1xf32>
      %cst_22 = arith.constant 0.000000e+00 : f32
      %30 = vector.broadcast %cst_22 : f32 to vector<1x1xf32>
      %31 = arith.subf %30, %24 : vector<1x1xf32>
      %32 = arith.divf %31, %29 : vector<1x1xf32>
      %33 = math.roundeven %32 : vector<1x1xf32>
      %c0_23 = arith.constant 0 : index
      %c0_24 = arith.constant 0 : index
      %34 = vector.load %arg2[%c0_23, %c0_24] : memref<1x1xf32, #tpu.memory_space<vmem>>, vector<1x1xf32>
      tpu.vector_store %arg2[%c0_23, %c0_24], %29 {strides = array<i32>} : memref<1x1xf32, #tpu.memory_space<vmem>>, vector<1x1xf32>,
      %cst_25 = arith.constant 1.000000e+00 : f32
      %35 = vector.broadcast %cst_25 : f32 to vector<1x1xf32>
      %36 = arith.divf %35, %29 : vector<1x1xf32>
      %c0_26 = arith.constant 0 : index
      %c0_27 = arith.constant 0 : index
      %37 = vector.load %arg3[%c0_26, %c0_27] : memref<1x1xf32, #tpu.memory_space<vmem>>, vector<1x1xf32>
      tpu.vector_store %arg3[%c0_26, %c0_27], %36 {strides = array<i32>} : memref<1x1xf32, #tpu.memory_space<vmem>>, vector<1x1xf32>,
      %c0_28 = arith.constant 0 : index
      %c0_29 = arith.constant 0 : index
      %38 = vector.load %arg4[%c0_28, %c0_29] : memref<1x1xf32, #tpu.memory_space<vmem>>, vector<1x1xf32>
      tpu.vector_store %arg4[%c0_28, %c0_29], %33 {strides = array<i32>} : memref<1x1xf32, #tpu.memory_space<vmem>>, vector<1x1xf32>,
    } else {
    }
    return
  }
  func.func @transform_0(%arg0: i32) -> (i32, i32) {
    %c0_i32 = arith.constant 0 : i32
    %c0_i32_0 = arith.constant 0 : i32
    return %arg0, %c0_i32 : i32, i32
  }
  func.func @transform_1(%arg0: i32) -> (i32, i32) {
    %c0_i32 = arith.constant 0 : i32
    %c0_i32_0 = arith.constant 0 : i32
    %c0_i32_1 = arith.constant 0 : i32
    return %c0_i32, %c0_i32_0 : i32, i32
  }
  func.func @transform_2(%arg0: i32) -> (i32, i32) {
    %c0_i32 = arith.constant 0 : i32
    %c0_i32_0 = arith.constant 0 : i32
    %c0_i32_1 = arith.constant 0 : i32
    return %c0_i32, %c0_i32_0 : i32, i32
  }
  func.func @transform_3(%arg0: i32) -> (i32, i32) {
    %c0_i32 = arith.constant 0 : i32
    %c0_i32_0 = arith.constant 0 : i32
    %c0_i32_1 = arith.constant 0 : i32
    return %c0_i32, %c0_i32_0 : i32, i32
  }
}

</mosaic_0001>

<bundles_post_ra>
// kernel: tpu_custom_call.1
= control target key start
LH: loop header
LB: loop body
LE: loop exit
PB: predicated region body
PF: predicated region fallthrough
CT: control target
= control target key end

     0   :  { %9 = vsyncpa [#allocation5], 0  ;;  %s270_s0 = inlined_call_operand.hbm [shape: f32[16,128], index: 0, kind: input, shape index: {}]   ;;  %s271_s1 = inlined_call_operand.hbm [shape: f32[1,1], index: 1, kind: output, shape index: {0}]   ;;  %s272_s2 = inlined_call_operand.hbm [shape: f32[1,1], index: 2, kind: output, shape index: {1}]   ;;  %s273_s3 = inlined_call_operand.hbm [shape: f32[1,1], index: 3, kind: output, shape index: {2}]  }
   0x1   :  { %10 = vsyncpa [#allocation6], 0 }
   0x2   :  { %11 = vsyncpa [#allocation9], 0  ;;  %s227_s12 = smov [#allocation4]  }
   0x3   :  { %s17_s13 = sshll.u32 %s227_s12, 4  ;;  %s18_s13 = int_to_ptr.vmem [resolvable:$true] %s17_s13 }
   0x4   :  { %s149_s14 = scalar_lea.vmem %s18_s13, 256  ;;  %p154_p1 = scmp.lt.s32.totalorder %s18_s13, %s18_s13 }
   0x5   :  { %p150_p0 = scmp.ne.s32.totalorder %s18_s13, %s149_s14  ;;  %p155_p2 = scmp.lt.s32.totalorder %s149_s14, %s149_s14 }
   0x7   :  { %p156_p3 = por %p155_p2, %p154_p1 }
   0x9   :  { %p157_p4 = pnand %p156_p3, %p150_p0 }
   0xb   :  { %160 = shalt.err (!%p157_p4)
}
   0xc   :  { %s228_s15 = smov 128   ;;  %s229_s16 = smov 8  }
   0xd   :  { %23 = dma.hbm_to_vmem [thread:$0]  %s270_s0, 256, %s18_s13, [#allocation5], %s228_s15, %s228_s15, %s229_s16  }
   0xe   :  { %221 = dma.done.wait [#allocation5], 256  }
   0xf   :  { %222 = vsyncadd [#allocation5], 4294967040  ;;  %v230_v0 = vmov inf   ;;  %v231_v1 = vmov -inf   ;;  %v33_v2 = vld [vmem:[#allocation4] sm:$0xff]  ;;  %v34_v3 = vld [vmem:[#allocation4 + $0x8] sm:$0xff] }
  0x10   :  { %31 = vst [vmem:[#allocation2] sm:$0x1] %v230_v0  ;;  %32 = vst [vmem:[#allocation3] sm:$0x1] %v231_v1  ;;  %v36_v4 = vmin.f32 %v33_v2, %v34_v3  ;;  %v46_v5 = vmax.f32 %v33_v2, %v34_v3  ;;  %vm59_vm0 = vcmask 1040384   ;;  %s232_s0 = smov [#allocation7]  }
  0x11   :  { %s87_s19 = sshll.u32 %s232_s0, 4  ;;  %vm76_vm1 = vcmask 0   ;;  %s88_s19 = int_to_ptr.vmem [resolvable:$true] %s87_s19 }
  0x12   :  { %v37_v6 = vrot.slane %v36_v4, 4  ;;  %v47_v7 = vrot.slane %v46_v5, 4  ;;  %s161_s20 = scalar_lea.vmem %s88_s19, 16  ;;  %s165_s21 = scalar_lea.vmem %s88_s19, 32 }
  0x13   :  { %p162_p5 = scmp.ne.s32.totalorder %s88_s19, %s161_s20  ;;  %p166_p6 = scmp.lt.s32.totalorder %s88_s19, %s88_s19 }
  0x14   :  { %v38_v8 = vmin.f32 %v36_v4, %v37_v6  ;;  %v48_v9 = vmax.f32 %v46_v5, %v47_v7  ;;  %p167_p7 = scmp.lt.s32.totalorder %s165_s21, %s161_s20 }
  0x16   :  { %v39_v10 = vrot.slane %v38_v8, 2  ;;  %v49_v11 = vrot.slane %v48_v9, 2  ;;  %p168_p8 = por %p167_p7, %p166_p6 }
  0x17   :  { %v35_v16 = vld [vmem:[#allocation2] sm:$0x1]  ;;  %v45_v17 = vld [vmem:[#allocation3] sm:$0x1] }
  0x18   :  { %v40_v12 = vmin.f32 %v38_v8, %v39_v10  ;;  %v50_v13 = vmax.f32 %v48_v9, %v49_v11  ;;  %p169_p9 = pnand %p168_p8, %p162_p5 }
  0x1a   :  { %v41_v14 = vrot.slane %v40_v12, 1  ;;  %v51_v15 = vrot.slane %v50_v13, 1 }
  0x1c   :  { %v42_v18 = vmin.f32 %v40_v12, %v41_v14  ;;  %v52_v19 = vmax.f32 %v50_v13, %v51_v15 }
  0x1e   :  { %v43_v20 = vmin.f32 %v35_v16, %v42_v18  ;;  %v53_v21 = vmax.f32 %v45_v17, %v52_v19 }
  0x20   :  { %44 = vst [vmem:[#allocation2] sm:$0x1] %v43_v20  ;;  %54 = vst [vmem:[#allocation3] sm:$0x1] %v53_v21 }
  0x27   :  { %v58_v22 = vld [vmem:[#allocation2] sm:$0x1]  ;;  %v63_v23 = vld [vmem:[#allocation3] sm:$0x1] }
  0x28   :  { %v60_v24 = vsel %vm59_vm0, %v58_v22, inf  ;;  %v64_v25 = vsel %vm59_vm0, %v63_v23, -inf }
  0x29   :  { %61 = vmin.xlane.f32.xlu0 %v60_v24 }
  0x2d   :  { %65 = vmax.xlane.f32.xlu0 %v64_v25 }
  0xb2   :  { %v62_v26 = vpop.xlane.xlu0 %61 }
  0xb6   :  { %v66_v27 = vpop.xlane.xlu0 %65 }
  0xb7   :  { %v68_v28 = vsub.f32 %v66_v27, %v62_v26 }
  0xb9   :  { %v70_v29 = vmul.f32 0.003921569, %v68_v28 }
  0xbb   :  { %v71_v30 = vmax.f32 %v70_v29, 1e-08 }
  0xbd   :  { %139 = vrcp.f32 %v71_v30  ;;  %77 = vst.msk [vmem:[#allocation7] sm:$0x1] %vm76_vm1, %v71_v30 }
  0xbe   :  { %172 = shalt.err (!%p169_p9)
}
  0xbf   :  { %90 = dma.vmem_to_hbm [thread:$0]  %s88_s19, 16, %s271_s1, [#allocation6]   ;;  %v67_v31 = vmin.f32 %v62_v26, 0.0 }
  0xc0   :  { %s233_s24 = smov [#allocation8]  }
  0xc1   :  { %s97_s25 = sshll.u32 %s233_s24, 4  ;;  %v72_v32 = vsub.f32 0.0, %v67_v31  ;;  %s98_s25 = int_to_ptr.vmem [resolvable:$true] %s97_s25 }
  0xc2   :  { %s181_s26 = scalar_lea.vmem %s98_s25, 16  ;;  %s185_s27 = scalar_lea.vmem %s98_s25, 32 }
  0xc3   :  { %p182_p10 = scmp.ne.s32.totalorder %s98_s25, %s181_s26  ;;  %p186_p11 = scmp.lt.s32.totalorder %s98_s25, %s98_s25 }
  0xc4   :  { %p187_p12 = scmp.lt.s32.totalorder %s185_s27, %s181_s26 }
  0xc6   :  { %p188_p13 = por %p187_p12, %p186_p11 }
  0xc8   :  { %p189_p0 = pnand %p188_p13, %p182_p10 }
  0xca   :  { %v140_v33 = vpop.eup %139 }
  0xcb   :  { %79 = vst.msk [vmem:[#allocation8] sm:$0x1] %vm76_vm1, %v140_v33  ;;  %v74_v34 = vmul.f32 %v140_v33, %v72_v32 }
  0xcc   :  { %192 = shalt.err (!%p189_p0)
}
  0xcd   :  { %100 = dma.vmem_to_hbm [thread:$0]  %s98_s25, 16, %s272_s2, [#allocation9]   ;;  %v125_v35 = vcvt.f32.s32 %v74_v34  ;;  %v123_v37 = vand.u32 2147483647, %v74_v34  ;;  %v128_v39 = vand.u32 2147483648, %v74_v34 }
  0xce   :  { %s234_s1 = smov [#allocation10]  }
  0xcf   :  { %v126_v36 = vcvt.s32.f32 %v125_v35  ;;  %s107_s30 = sshll.u32 %s234_s1, 4  ;;  %vm124_vm2 = vcmp.lt.f32.partialorder %v123_v37, 8388608.0  ;;  %s108_s30 = int_to_ptr.vmem [resolvable:$true] %s107_s30 }
  0xd0   :  { %s201_s4 = scalar_lea.vmem %s108_s30, 16  ;;  %s205_s5 = scalar_lea.vmem %s108_s30, 32 }
  0xd1   :  { %v127_v38 = vand.u32 2147483647, %v126_v36  ;;  %p202_p1 = scmp.ne.s32.totalorder %s108_s30, %s201_s4  ;;  %p206_p2 = scmp.lt.s32.totalorder %s108_s30, %s108_s30 }
  0xd2   :  { %p207_p3 = scmp.lt.s32.totalorder %s205_s5, %s201_s4 }
  0xd3   :  { %v129_v40 = vor.u32 %v128_v39, %v127_v38 }
  0xd4   :  { %p208_p4 = por %p207_p3, %p206_p2 }
  0xd5   :  { %v130_v41 = vsel %vm124_vm2, %v129_v40, %v74_v34 }
  0xd6   :  { %80 = vst.msk [vmem:[#allocation10] sm:$0x1] %vm76_vm1, %v130_v41  ;;  %p209_p5 = pnand %p208_p4, %p202_p1 }
  0xd8   :  { %212 = shalt.err (!%p209_p5)
}
  0xd9   :  { %110 = dma.vmem_to_hbm [thread:$0]  %s108_s30, 16, %s273_s3, [#allocation9]  }
  0xda   :  { %223 = dma.done.wait [#allocation6], 16  }
  0xdb   :  { %224 = vsyncadd [#allocation6], 4294967280 }
  0xdc   :  { %225 = dma.done.wait [#allocation9], 32  }
  0xdd   :  { %226 = vsyncadd [#allocation9], 4294967264 }
  0xde   :  { %120 = vsyncpa [#allocation5], 1 }
  0xdf   :  { %121 = vsyncpa [#allocation6], 1 }
  0xe0   :  { %122 = vsyncpa [#allocation9], 1 }

</bundles_post_ra>
